<compile_context>
chip_gen: v7x
topology: tpu7x:2x2x1
jax: 0.10.0
libtpu: 0.0.40
codegen_flags: <defaults>
</compile_context>

<pallas_src>
import jax
import jax.numpy as jnp
from jax.experimental import pallas as pl
from jax.experimental.pallas import tpu as pltpu


def policy_net_kernel(xt_ref, w1_ref, b1_ref, w2_ref, b2_ref, out_ref):
    """Fused lane-dense MLP policy head (batch on the lane axis).

    xt_ref : [state_dim, Bt]      input, batch on lanes
    w1_ref : [hidden, state_dim]  PyTorch fc1.weight layout (used directly)
    b1_ref : [hidden, 1]
    w2_ref : [action_dim, hidden] PyTorch fc2.weight layout
    b2_ref : [action_dim, 1]
    out_ref: [action_dim, Bt]     softmax over axis 0 (== dim=1 of [B, A])
    """
    xt = xt_ref[...]

    # fc1: W1 @ x^T + b1 -> [hidden, Bt], then ReLU
    h = jnp.dot(w1_ref[...], xt, preferred_element_type=jnp.float32) + b1_ref[...]
    h = jnp.maximum(h, 0.0)

    # fc2: W2 @ h + b2 -> [action_dim, Bt]
    logits = (
        jnp.dot(w2_ref[...], h.astype(w2_ref.dtype),
                preferred_element_type=jnp.float32)
        + b2_ref[...]
    )

    # softmax over the action axis (axis 0 here), max-subtracted for stability.
    m = jnp.max(logits, axis=0, keepdims=True)
    e = jnp.exp(logits - m)
    denom = jnp.sum(e, axis=0, keepdims=True)
    # approx reciprocal -> EUP slot; ~1e-3 rel error. Fine for a sampling policy
    # head; do not rely on exact per-row normalization downstream.
    out_ref[...] = (e * pl.reciprocal(denom, approx=True)).astype(out_ref.dtype)


def _cost_estimate(B, state_dim, hidden_dim, action_dim):
    flops = 2 * B * state_dim * hidden_dim + 2 * B * hidden_dim * action_dim
    transcendentals = B * action_dim + B  # exp + reciprocal
    bytes_accessed = 4 * (
        B * state_dim
        + hidden_dim * state_dim
        + hidden_dim
        + action_dim * hidden_dim
        + action_dim
        + B * action_dim
    )
    return pl.CostEstimate(
        flops=flops, transcendentals=transcendentals, bytes_accessed=bytes_accessed
    )


def policy_net_forward_lanedense(xt, w1, b1, w2, b2, *, tile_b=2048):
    """Lane-dense entry point.

    xt: [state_dim, B] (batch on the last/lane axis)
    w1: [hidden, state_dim], b1: [hidden, 1]
    w2: [action_dim, hidden], b2: [action_dim, 1]
    Returns probs^T: [action_dim, B].
    """
    state_dim, B = xt.shape
    hidden_dim = w1.shape[0]
    action_dim = w2.shape[0]
    cost = _cost_estimate(B, state_dim, hidden_dim, action_dim)
    out_shape = jax.ShapeDtypeStruct((action_dim, B), jnp.float32)

    if B <= tile_b:
        # Small batch: grid-free single invocation, everything VMEM-resident
        # (x tile is <= [state_dim, tile_b] f32 = 128 KiB -> safe on v7x too).
        vmem = pl.BlockSpec(memory_space=pltpu.MemorySpace.VMEM)
        return pl.pallas_call(
            policy_net_kernel,
            out_shape=out_shape,
            in_specs=[vmem, vmem, vmem, vmem, vmem],
            out_specs=vmem,
            cost_estimate=cost,
        )(xt, w1, b1, w2, b2)

    # Large batch (divisible or not): tile the lane axis; weights/biases stay
    # resident (same block every step). Ragged last block is masked by Pallas;
    # garbage padded columns only affect their own (dropped) stores.
    grid = (pl.cdiv(B, tile_b),)
    return pl.pallas_call(
        policy_net_kernel,
        out_shape=out_shape,
        grid=grid,
        in_specs=[
            pl.BlockSpec((state_dim, tile_b), lambda i: (0, i)),
            pl.BlockSpec((hidden_dim, state_dim), lambda i: (0, 0)),
            pl.BlockSpec((hidden_dim, 1), lambda i: (0, 0)),
            pl.BlockSpec((action_dim, hidden_dim), lambda i: (0, 0)),
            pl.BlockSpec((action_dim, 1), lambda i: (0, 0)),
        ],
        out_specs=pl.BlockSpec((action_dim, tile_b), lambda i: (0, i)),
        # "parallel" lets Mosaic shard the batch axis across TCs where
        # supported; portable across v5e/v6e/v7x (near-neutral on single-TC).
        compiler_params=pltpu.CompilerParams(dimension_semantics=("parallel",)),
        cost_estimate=cost,
    )(xt, w1, b1, w2, b2)


def policy_net_forward(x, w1, b1, w2, b2, *, tile_b=2048):
    """PyTorch-layout adapter: x [B, state_dim] -> probs [B, action_dim].

    The transposes here are wrapper-side layout plumbing; callers that can keep
    the batch on the last axis should use policy_net_forward_lanedense directly.
    """
    probs_t = policy_net_forward_lanedense(x.T, w1, b1, w2, b2, tile_b=tile_b)
    return probs_t.T


def init_policy_net_params(key, state_dim, hidden_dim, action_dim):
    """PyTorch nn.Linear default init: U(-1/sqrt(fan_in), 1/sqrt(fan_in)).
    Weights kept in PyTorch [out, in] layout; biases stored as [out, 1] so they
    broadcast along lanes inside the transposed kernel."""
    k1, k2, k3, k4 = jax.random.split(key, 4)
    bound1 = 1.0 / jnp.sqrt(state_dim)
    bound2 = 1.0 / jnp.sqrt(hidden_dim)
    w1 = jax.random.uniform(k1, (hidden_dim, state_dim), jnp.float32, -bound1, bound1)
    b1 = jax.random.uniform(k2, (hidden_dim, 1), jnp.float32, -bound1, bound1)
    w2 = jax.random.uniform(k3, (action_dim, hidden_dim), jnp.float32, -bound2, bound2)
    b2 = jax.random.uniform(k4, (action_dim, 1), jnp.float32, -bound2, bound2)
    return w1, b1, w2, b2


def _reference(x, w1, b1, w2, b2):
    h = jnp.maximum(x @ w1.T + b1.reshape(1, -1), 0.0)
    return jax.nn.softmax(h @ w2.T + b2.reshape(1, -1), axis=1)


if __name__ == "__main__":
    # Small shapes consistent with the module: state_dim=16, hidden=32, actions=4
    batch, state_dim, hidden_dim, action_dim = 8, 16, 32, 4

    key = jax.random.PRNGKey(0)
    kx, kp, kx2, kx3 = jax.random.split(key, 4)
    x = jax.random.normal(kx, (batch, state_dim), dtype=jnp.float32)
    w1, b1, w2, b2 = init_policy_net_params(kp, state_dim, hidden_dim, action_dim)

    # --- Path 1: small batch, grid-free kernel via the PyTorch-layout adapter ---
    probs = jax.block_until_ready(policy_net_forward(x, w1, b1, w2, b2))
    probs_ref = _reference(x, w1, b1, w2, b2)
    assert probs.shape == (batch, action_dim)
    assert jnp.allclose(probs, probs_ref, atol=3e-3, rtol=3e-3)
    assert jnp.allclose(jnp.sum(probs, axis=1), 1.0, atol=5e-3)

    # --- Path 2: large divisible batch, tiled lane-dense kernel ---
    big_b, tile_b = 4096, 2048
    xt_big = jax.random.normal(kx2, (state_dim, big_b), dtype=jnp.float32)
    probs_t_big = jax.block_until_ready(
        policy_net_forward_lanedense(xt_big, w1, b1, w2, b2, tile_b=tile_b)
    )
    probs_big_ref = _reference(xt_big.T, w1, b1, w2, b2)
    assert probs_t_big.shape == (action_dim, big_b)
    assert jnp.allclose(probs_t_big.T, probs_big_ref, atol=3e-3, rtol=3e-3)
    assert jnp.allclose(jnp.sum(probs_t_big, axis=0), 1.0, atol=5e-3)

    # --- Path 3: large NON-divisible batch -> pl.cdiv grid, masked last block ---
    rag_b = 2500
    xt_rag = jax.random.normal(kx3, (state_dim, rag_b), dtype=jnp.float32)
    probs_t_rag = jax.block_until_ready(
        policy_net_forward_lanedense(xt_rag, w1, b1, w2, b2, tile_b=1024)
    )
    probs_rag_ref = _reference(xt_rag.T, w1, b1, w2, b2)
    assert probs_t_rag.shape == (action_dim, rag_b)
    assert jnp.allclose(probs_t_rag.T, probs_rag_ref, atol=3e-3, rtol=3e-3)
    assert jnp.allclose(jnp.sum(probs_t_rag, axis=0), 1.0, atol=5e-3)

    print("KERNEL_OK")
</pallas_src>

<mosaic_0001>
module attributes {stable_mosaic.version = 11 : i64} {
  func.func @policy_net_kernel(%arg0: memref<16x8xf32, #tpu.memory_space<vmem>>, %arg1: memref<32x16xf32, #tpu.memory_space<vmem>>, %arg2: memref<32x1xf32, #tpu.memory_space<vmem>>, %arg3: memref<4x32xf32, #tpu.memory_space<vmem>>, %arg4: memref<4x1xf32, #tpu.memory_space<vmem>>, %arg5: memref<4x8xf32, #tpu.memory_space<vmem>>) attributes {dimension_semantics = [], scalar_prefetch = 0 : i64, scratch_operands = 0 : i64, tpu.core_type = #tpu.core_type<tc>} {
    %c0 = arith.constant 0 : index
    %c0_0 = arith.constant 0 : index
    %0 = vector.load %arg0[%c0, %c0_0] : memref<16x8xf32, #tpu.memory_space<vmem>>, vector<16x8xf32>
    %c0_1 = arith.constant 0 : index
    %c0_2 = arith.constant 0 : index
    %1 = vector.load %arg1[%c0_1, %c0_2] : memref<32x16xf32, #tpu.memory_space<vmem>>, vector<32x16xf32>
    %cst = arith.constant dense<0.000000e+00> : vector<32x8xf32>
    %2 = tpu.matmul %1, %0, %cst {dimension_numbers = #tpu.dot_dimension_numbers<[1], [0], [0], [1], [0, 0, 1, 1], [], []>} : vector<32x16xf32>, vector<16x8xf32>, vector<32x8xf32> -> vector<32x8xf32>
    %c0_3 = arith.constant 0 : index
    %c0_4 = arith.constant 0 : index
    %3 = vector.load %arg2[%c0_3, %c0_4] : memref<32x1xf32, #tpu.memory_space<vmem>>, vector<32x1xf32>
    %4 = vector.broadcast %3 : vector<32x1xf32> to vector<32x8xf32>
    %5 = arith.addf %2, %4 : vector<32x8xf32>
    %cst_5 = arith.constant 0.000000e+00 : f32
    %6 = vector.broadcast %cst_5 : f32 to vector<32x8xf32>
    %7 = arith.maximumf %5, %6 : vector<32x8xf32>
    %c0_6 = arith.constant 0 : index
    %c0_7 = arith.constant 0 : index
    %8 = vector.load %arg3[%c0_6, %c0_7] : memref<4x32xf32, #tpu.memory_space<vmem>>, vector<4x32xf32>
    %cst_8 = arith.constant dense<0.000000e+00> : vector<4x8xf32>
    %9 = tpu.matmul %8, %7, %cst_8 {dimension_numbers = #tpu.dot_dimension_numbers<[1], [0], [0], [1], [0, 0, 1, 1], [], []>} : vector<4x32xf32>, vector<32x8xf32>, vector<4x8xf32> -> vector<4x8xf32>
    %c0_9 = arith.constant 0 : index
    %c0_10 = arith.constant 0 : index
    %10 = vector.load %arg4[%c0_9, %c0_10] : memref<4x1xf32, #tpu.memory_space<vmem>>, vector<4x1xf32>
    %11 = vector.broadcast %10 : vector<4x1xf32> to vector<4x8xf32>
    %12 = arith.addf %9, %11 : vector<4x8xf32>
    %cst_11 = arith.constant dense<0xFF800000> : vector<8xf32>
    %13 = vector.multi_reduction <maximumf>, %12, %cst_11 [0] : vector<4x8xf32> to vector<8xf32>
    %14 = vector.shape_cast %13 : vector<8xf32> to vector<1x8xf32>
    %15 = vector.broadcast %14 : vector<1x8xf32> to vector<4x8xf32>
    %16 = arith.subf %12, %15 : vector<4x8xf32>
    %17 = math.exp %16 : vector<4x8xf32>
    %cst_12 = arith.constant dense<0.000000e+00> : vector<8xf32>
    %18 = vector.multi_reduction <add>, %17, %cst_12 [0] : vector<4x8xf32> to vector<8xf32>
    %19 = vector.shape_cast %18 : vector<8xf32> to vector<1x8xf32>
    %20 = tpu.reciprocal %19 {approx = true} : vector<1x8xf32> -> vector<1x8xf32>
    %21 = vector.broadcast %20 : vector<1x8xf32> to vector<4x8xf32>
    %22 = arith.mulf %17, %21 : vector<4x8xf32>
    %c0_13 = arith.constant 0 : index
    %c0_14 = arith.constant 0 : index
    %23 = vector.load %arg5[%c0_13, %c0_14] : memref<4x8xf32, #tpu.memory_space<vmem>>, vector<4x8xf32>
    tpu.vector_store %arg5[%c0_13, %c0_14], %22 {strides = array<i32>} : memref<4x8xf32, #tpu.memory_space<vmem>>, vector<4x8xf32>,
    return
  }
}

</mosaic_0001>

<bundles_post_ra>
// kernel: tpu_custom_call.1
= control target key start
LH: loop header
LB: loop body
LE: loop exit
PB: predicated region body
PF: predicated region fallthrough
CT: control target
= control target key end

     0   :  { %vm51_vm0 = vcmask 130048   ;;  %v351_v4 = vmov 0   ;;  %s441_s0 = inlined_call_operand.vmem [shape: f32[16,8], index: 0, kind: input, shape index: {}]   ;;  %s442_s1 = inlined_call_operand.vmem [shape: f32[32,16], index: 1, kind: input, shape index: {}]   ;;  %s443_s2 = inlined_call_operand.vmem [shape: f32[32,1], index: 2, kind: input, shape index: {}]   ;;  %s444_s3 = inlined_call_operand.vmem [shape: f32[4,32], index: 3, kind: input, shape index: {}]   ;;  %s445_s4 = inlined_call_operand.vmem [shape: f32[4,1], index: 4, kind: input, shape index: {}]   ;;  %s446_s5 = inlined_call_operand.hbm [shape: f32[4,8], index: 5, kind: output, shape index: {}]  }
   0x1   :  { %v21_v0 = vld [vmem:[%s441_s0] sm:$0xff]  ;;  %v22_v1 = vld [vmem:[%s441_s0 + $0x8] sm:$0xff]  ;;  %321 = vset.pattern.permute.xlu0 %v351_v4  ;;  %322 = vset.pattern.permute.xlu1 %v351_v4  ;;  %v29_v6 = vld [vmem:[%s443_s2 + $0x10] sm:$0xff] }
   0x2   :  { %v23_v2 = vld [vmem:[%s442_s1] sm:$0xff]  ;;  %v306_v3 = vpack.c.bf16 %v22_v1, %v21_v0 }
   0x3   :  { %289 = vmatprep.mubr.msk.f32.mxu0 %vm51_vm0, %v23_v2  ;;  %v27_v5 = vld [vmem:[%s443_s2] sm:$0xff] }
   0x4   :  { %307 = vmatprep.subr.bf16.mxu0 %v306_v3  ;;  %33 = vperm.xlu0 %321, %v27_v5  }
   0x5   :  { %10 = vsyncpa [#allocation3], 0  ;;  %309 = vmatpush3.bf16.msra.mxu0 %v306_v3  ;;  %v24_v7 = vld [vmem:[%s442_s1 + $0x8] sm:$0xff]  ;;  %43 = vperm.xlu1 %322, %v29_v6   ;;  %v25_v9 = vld [vmem:[%s442_s1 + $0x10] sm:$0xff]  ;;  %v352_v13 = vmov 0.0|0.0   ;;  %vm353_vm1 = vmmov 0  }
   0x6   :  { %v28_v8 = vld [vmem:[%s443_s2 + $0x8] sm:$0xff]  ;;  %v30_v10 = vld [vmem:[%s443_s2 + $0x18] sm:$0xff]  ;;  %v154_v12 = vld [vmem:[%s445_s4] sm:$0xf]  ;;  %310 = vmatprep.subr.bf16.mxu1 %v352_v13  ;;  %v354_v14 = vmov 0.0   ;;  %vm160_vm2 = vcmask 261120  }
   0x7   :  { %v26_v11 = vld [vmem:[%s442_s1 + $0x18] sm:$0xff]  ;;  %303 = vmatprep.mubr.msk.f32.mxu1 %vm353_vm1, %v354_v14  ;;  %v153_v33 = vld [vmem:[%s444_s3] sm:$0xf]  ;;  %vm234_vm3 = vcmask 60416   ;;  %s355_s3 = smov [#allocation2]  }
   0x8   :  { %290 = vmatmul.mubr.msk.f32.vlgmr.msra.gmra.mrb[0].mxu0 %vm51_vm0, %v24_v7  ;;  %38 = vperm.xlu0 %321, %v28_v8   ;;  %s261_s4 = sshll.u32 %s355_s3, 4  ;;  %s262_s4 = int_to_ptr.vmem [resolvable:$true] %s261_s4 }
   0x9   :  { %292 = vmatprep.mubr.msk.f32.mxu0 %vm51_vm0, %v25_v9  ;;  %48 = vperm.xlu1 %322, %v30_v10   ;;  %s327_s14 = scalar_lea.vmem %s262_s4, 64  ;;  %p332_p1 = scmp.lt.s32.totalorder %s262_s4, %s262_s4 }
   0xa   :  { %p328_p0 = scmp.ne.s32.totalorder %s262_s4, %s327_s14  ;;  %p333_p2 = scmp.lt.s32.totalorder %s327_s14, %s327_s14 }
   0xc   :  { %293 = vmatmul.mubr.msk.f32.gmra.mrb[2].mxu0 %vm51_vm0, %v26_v11  ;;  %157 = vperm.xlu0 %321, %v154_v12   ;;  %p334_p3 = por %p333_p2, %p332_p1 }
   0xe   :  { %p335_p4 = pnand %p334_p3, %p328_p0 }
  0x83   :  { %v34_v15 = vpop.permute.xlu0 %33 }
  0x84   :  { %v44_v16 = vpop.permute.xlu1 %43 }
  0x87   :  { %v39_v17 = vpop.permute.xlu0 %38 }
  0x88   :  { %v49_v23 = vpop.permute.xlu1 %48 }
  0x8b   :  { %v158_v34 = vpop.permute.xlu0 %157 }
  0xdb   :  { %v291_v18 = vpop.f32.mrb[0].mxu0 }
  0xdc   :  { %v136_v19 = vadd.f32 %v291_v18, %v39_v17  ;;  %v130_v20 = vpop.f32.mrb[1].mxu0 }
  0xdd   :  { %v131_v21 = vadd.f32 %v130_v20, %v34_v15 }
  0xde   :  { %v150_v22 = vmax.f32 %v136_v19, 0.0 }
  0xdf   :  { %v149_v24 = vmax.f32 %v131_v21, 0.0  ;;  %v294_v25 = vpop.f32.mrb[2].mxu0 }
  0xe0   :  { %v146_v26 = vadd.f32 %v294_v25, %v49_v23  ;;  %v140_v27 = vpop.f32.mrb[3].mxu0 }
  0xe1   :  { %v141_v28 = vadd.f32 %v140_v27, %v44_v16  ;;  %v311_v29 = vpack.c.bf16 %v150_v22, %v149_v24 }
  0xe2   :  { %v152_v30 = vmax.f32 %v146_v26, 0.0 }
  0xe3   :  { %v151_v31 = vmax.f32 %v141_v28, 0.0  ;;  %312 = vmatpush3.bf16.msra.mxu1 %v311_v29 }
  0xe4   :  { %313 = vmatprep.subr.bf16.mxu1 %v352_v13 }
  0xe5   :  { %v314_v32 = vpack.c.bf16 %v152_v30, %v151_v31 }
  0xe7   :  { %315 = vmatpush3.bf16.msra.mxu1 %v314_v32 }
  0xea   :  { %304 = vmatmul.mubr.msk.f32.vlgmr.msra.gmra.mrb[0].mxu1 %vm160_vm2, %v153_v33 }
 0x1bd   :  { %v230_v35 = vpop.f32.mrb[0].mxu1 }
 0x1be   :  { %v231_v36 = vadd.f32 %v230_v35, %v158_v34  ;;  %v305_v37 = vpop.f32.mrb[1].mxu1 }
 0x1c0   :  { %v235_v38 = vsel %vm234_vm3, %v231_v36, -inf }
 0x1c1   :  { %v236_v39 = vrot.slane %v235_v38, 4 }
 0x1c3   :  { %v237_v40 = vmax.f32 %v235_v38, %v236_v39 }
 0x1c5   :  { %v238_v41 = vrot.slane %v237_v40, 2 }
 0x1c7   :  { %v239_v42 = vmax.f32 %v237_v40, %v238_v41 }
 0x1c9   :  { %v240_v43 = vrot.slane %v239_v42, 1 }
 0x1cb   :  { %v241_v44 = vmax.f32 %v239_v42, %v240_v43 }
 0x1cd   :  { %v242_v45 = vsub.f32 %v231_v36, %v241_v44 }
 0x1cf   :  { %v243_v46 = vmul.f32 1.442695, %v242_v45 }
 0x1d1   :  { %323 = vpow2.f32 %v243_v46 }
 0x1db   :  { %v324_v47 = vpop.eup %323 }
 0x1dc   :  { %v245_v48 = vsel %vm234_vm3, %v324_v47, 0.0 }
 0x1dd   :  { %v246_v49 = vrot.slane %v245_v48, 4 }
 0x1df   :  { %v247_v50 = vadd.f32 %v246_v49, %v245_v48 }
 0x1e1   :  { %v248_v51 = vrot.slane %v247_v50, 2 }
 0x1e3   :  { %v249_v52 = vadd.f32 %v248_v51, %v247_v50 }
 0x1e5   :  { %v250_v53 = vrot.slane %v249_v52, 1 }
 0x1e7   :  { %v251_v54 = vadd.f32 %v250_v53, %v249_v52 }
 0x1e9   :  { %325 = vrcp.f32 %v251_v54 }
 0x1f3   :  { %v326_v55 = vpop.eup %325 }
 0x1f4   :  { %v253_v56 = vmul.f32 %v326_v55, %v324_v47 }
 0x1f6   :  { %254 = vst.msk [vmem:[#allocation2] sm:$0xf] %vm234_vm3, %v253_v56 }
 0x1f7   :  { %338 = shalt.err (!%p335_p4)
}
 0x1f8   :  { %s339_s17 = scalar_lea.hbm %s446_s5, 64 }
 0x1f9   :  { %p340_p5 = scmp.ne.s32.totalorder %s446_s5, %s339_s17  ;;  %p343_p6 = scmp.lt.u32.totalorder %s339_s17, %s446_s5 }
 0x1fb   :  { %p345_p7 = pnand %p343_p6, %p340_p5 }
 0x1fd   :  { %348 = shalt.err (!%p345_p7)
}
 0x1fe   :  { %264 = dma.vmem_to_hbm [thread:$0]  %s262_s4, 64, %s446_s5, [#allocation3]  }
 0x1ff   :  { %349 = dma.done.wait [#allocation3], 64  }
 0x200   :  { %350 = vsyncadd [#allocation3], 4294967232 }
 0x201   :  { %268 = vsyncpa [#allocation3], 1 }

</bundles_post_ra>
